<compile_context>
chip_gen: v7x
topology: tpu7x:2x2x1
jax: 0.10.0
libtpu: 0.0.40
codegen_flags: <defaults>
</compile_context>

<pallas_src>
import functools

import jax
import jax.numpy as jnp
from jax.experimental import pallas as pl
from jax.experimental.pallas import tpu as pltpu


def _round_up(x, m):
    return ((x + m - 1) // m) * m


def _mlp_kernel(x_ref, wgu_ref, bgu_ref, wd_ref, bd_ref, o_ref, acc_ref):
    # x_ref:   (tm, Hd)       token tile (compute dtype, e.g. bf16)
    # wgu_ref: (Hd, 2*tk)     [gate | up] projection slice for this k block
    # bgu_ref: (1, 2*tk)      [bg | bu] slice (f32)
    # wd_ref:  (tk, Hd)       down projection slice
    # bd_ref:  (1, Hd)        down bias (f32)
    # o_ref:   (tm, Hd)       output tile (resident across the k axis)
    # acc_ref: (tm, Hd) f32   VMEM accumulator
    k = pl.program_id(1)

    @pl.when(k == 0)
    def _():
        acc_ref[...] = jnp.zeros_like(acc_ref)

    tk = wgu_ref.shape[-1] // 2  # static at trace time

    # One fused MXU matmul for gate+up; f32 accumulate.
    gu = jnp.dot(x_ref[...], wgu_ref[...],
                 preferred_element_type=jnp.float32) + bgu_ref[...]
    gate = jax.nn.gelu(gu[:, :tk], approximate=True)   # gelu_pytorch_tanh
    up = gu[:, tk:]
    h = (gate * up).astype(wd_ref.dtype)
    acc_ref[...] += jnp.dot(h, wd_ref[...],
                            preferred_element_type=jnp.float32)

    @pl.when(k == pl.num_programs(1) - 1)
    def _():
        o_ref[...] = (acc_ref[...] + bd_ref[...]).astype(o_ref.dtype)


def recurrent_gemma_mlp_pallas(hidden_states, wg, bg, wu, bu, wd, bd,
                               *, tm=None, tk=None,
                               compute_dtype=jnp.bfloat16):
    """RecurrentGemmaMlp forward.

    hidden_states: (B, S, hidden)
    wg, wu: (intermediate, hidden)   -- PyTorch nn.Linear weight layout
    bg, bu: (intermediate,)
    wd:     (hidden, intermediate)
    bd:     (hidden,)
    """
    B, S, Hd = hidden_states.shape
    I = wg.shape[0]
    M = B * S

    # ---- tile sizes (128-lane / 8-sublane friendly) -------------------------
    if tm is None:
        tm = 256 if M >= 256 else _round_up(M, 8)
    if tk is None:
        tk = 512 if I >= 512 else _round_up(I, 128)

    M_pad = _round_up(M, tm)
    I_pad = _round_up(I, tk)
    nK = I_pad // tk

    # ---- hoisted, batch-invariant prep (done once, outside the kernel) ------
    x2d = hidden_states.reshape(M, Hd)
    if M_pad != M:
        x2d = jnp.pad(x2d, ((0, M_pad - M), (0, 0)))
    x2d = x2d.astype(compute_dtype)

    if I_pad != I:
        # zero-padding the intermediate dim is exact: padded lanes contribute
        # gelu(0)*0 = 0 to the down projection.
        wg = jnp.pad(wg, ((0, I_pad - I), (0, 0)))
        wu = jnp.pad(wu, ((0, I_pad - I), (0, 0)))
        bg = jnp.pad(bg, (0, I_pad - I))
        bu = jnp.pad(bu, (0, I_pad - I))
        wd = jnp.pad(wd, ((0, 0), (0, I_pad - I)))

    # Interleave gate/up per reduction block so one BlockSpec (Hd, 2*tk)
    # delivers both weight slices contiguously.
    wg_t = wg.T.reshape(Hd, nK, tk)
    wu_t = wu.T.reshape(Hd, nK, tk)
    w_gu = jnp.concatenate([wg_t, wu_t], axis=2).reshape(Hd, nK * 2 * tk)
    w_gu = w_gu.astype(compute_dtype)
    b_gu = jnp.concatenate([bg.reshape(nK, tk), bu.reshape(nK, tk)],
                           axis=1).reshape(1, nK * 2 * tk).astype(jnp.float32)
    wd_t = wd.T.astype(compute_dtype)                  # (I_pad, Hd)
    bd2 = bd.reshape(1, Hd).astype(jnp.float32)

    grid = (M_pad // tm, nK)   # (token tiles [parallel], reduction [arbitrary])

    # ---- VMEM budget (double-buffered inputs/outputs + f32 accumulator) -----
    cb = jnp.dtype(compute_dtype).itemsize
    ob = jnp.dtype(hidden_states.dtype).itemsize
    vmem_needed = (2 * ((Hd * 2 * tk + tk * Hd + tm * Hd) * cb
                        + tm * Hd * ob + (2 * tk + Hd) * 4)
                   + tm * Hd * 4)
    vmem_limit = int(min(max(vmem_needed * 5 // 4 + (1 << 20), 16 << 20),
                         48 << 20))  # stay inside v7x's 64 MiB physical VMEM

    cost = pl.CostEstimate(
        flops=6 * M * Hd * I,
        transcendentals=M * I,
        bytes_accessed=(M_pad * Hd * cb
                        + (M_pad // tm) * 3 * Hd * I_pad * cb
                        + M_pad * Hd * ob),
    )

    out2d = pl.pallas_call(
        _mlp_kernel,
        out_shape=jax.ShapeDtypeStruct((M_pad, Hd), hidden_states.dtype),
        grid_spec=pltpu.PrefetchScalarGridSpec(
            num_scalar_prefetch=0,
            grid=grid,
            in_specs=[
                pl.BlockSpec((tm, Hd), lambda i, k: (i, 0)),       # x (k-invariant)
                pl.BlockSpec((Hd, 2 * tk), lambda i, k: (0, k)),   # [Wg|Wu] slice
                pl.BlockSpec((1, 2 * tk), lambda i, k: (0, k)),    # [bg|bu] slice
                pl.BlockSpec((tk, Hd), lambda i, k: (k, 0)),       # Wd^T slice
                pl.BlockSpec((1, Hd), lambda i, k: (0, 0)),        # bd
            ],
            out_specs=pl.BlockSpec((tm, Hd), lambda i, k: (i, 0)),
            scratch_shapes=[pltpu.VMEM((tm, Hd), jnp.float32)],
        ),
        compiler_params=pltpu.CompilerParams(
            dimension_semantics=("parallel", "arbitrary"),
            vmem_limit_bytes=vmem_limit,
        ),
        cost_estimate=cost,
    )(x2d, w_gu, b_gu, wd_t, bd2)

    return out2d[:M].reshape(B, S, Hd)


# ---------------------------- pure-JAX reference -----------------------------
def mlp_ref(x, wg, bg, wu, bu, wd, bd, compute_dtype=jnp.bfloat16):
    """Reference matching the kernel's numerics: bf16 matmul inputs, f32 acc."""
    xc = x.astype(compute_dtype)
    gate = jnp.dot(xc, wg.T.astype(compute_dtype),
                   preferred_element_type=jnp.float32) + bg
    up = jnp.dot(xc, wu.T.astype(compute_dtype),
                 preferred_element_type=jnp.float32) + bu
    gate = jax.nn.gelu(gate, approximate=True)
    h = (gate * up).astype(compute_dtype)
    out = jnp.dot(h, wd.T.astype(compute_dtype),
                  preferred_element_type=jnp.float32) + bd
    return out.astype(x.dtype)


if __name__ == "__main__":
    B, S = 2, 8
    HIDDEN = 256          # config.hidden_size
    INTERMEDIATE = 512    # config.intermediate_size // 2

    key = jax.random.PRNGKey(0)
    kx, kwg, kbg, kwu, kbu, kwd, kbd = jax.random.split(key, 7)

    x = jax.random.normal(kx, (B, S, HIDDEN), dtype=jnp.float32)
    wg = jax.random.normal(kwg, (INTERMEDIATE, HIDDEN), jnp.float32) * 0.02
    bg = jax.random.normal(kbg, (INTERMEDIATE,), jnp.float32) * 0.02
    wu = jax.random.normal(kwu, (INTERMEDIATE, HIDDEN), jnp.float32) * 0.02
    bu = jax.random.normal(kbu, (INTERMEDIATE,), jnp.float32) * 0.02
    wd = jax.random.normal(kwd, (HIDDEN, INTERMEDIATE), jnp.float32) * 0.02
    bd = jax.random.normal(kbd, (HIDDEN,), jnp.float32) * 0.02

    # tk=256 splits the intermediate dim in two so the accumulator/reduction
    # path is exercised; tm defaults to the 16 tokens in one lane-dense tile.
    out = recurrent_gemma_mlp_pallas(x, wg, bg, wu, bu, wd, bd, tk=256)
    jax.block_until_ready(out)

    ref = mlp_ref(x, wg, bg, wu, bu, wd, bd)
    max_err = float(jnp.max(jnp.abs(out - ref)))
    assert jnp.allclose(out, ref, atol=2e-3, rtol=2e-3), f"mismatch: {max_err}"
    print("KERNEL_OK")
</pallas_src>

<mosaic_0001>
module attributes {stable_mosaic.version = 11 : i64} {
  func.func @_mlp_kernel(%arg0: i32, %arg1: i32, %arg2: memref<16x256xbf16, #tpu.memory_space<vmem>>, %arg3: memref<256x512xbf16, #tpu.memory_space<vmem>>, %arg4: memref<1x512xf32, #tpu.memory_space<vmem>>, %arg5: memref<256x256xbf16, #tpu.memory_space<vmem>>, %arg6: memref<1x256xf32, #tpu.memory_space<vmem>>, %arg7: memref<16x256xf32, #tpu.memory_space<vmem>>, %arg8: memref<16x256xf32, #tpu.memory_space<vmem>>) attributes {dimension_semantics = [#tpu.dimension_semantics<parallel>, #tpu.dimension_semantics<arbitrary>], iteration_bounds = array<i64: 1, 2>, scalar_prefetch = 0 : i64, scratch_operands = 1 : i64, tpu.core_type = #tpu.core_type<tc>, window_params = [{transform_indices = @transform_0, window_bounds = array<i64: 16, 256>}, {transform_indices = @transform_1, window_bounds = array<i64: 256, 512>}, {transform_indices = @transform_2, window_bounds = array<i64: 1, 512>}, {transform_indices = @transform_3, window_bounds = array<i64: 256, 256>}, {pipeline_mode = #tpu.pipeline_mode<synchronous>, transform_indices = @transform_4, window_bounds = array<i64: 1, 256>}, {transform_indices = @transform_5, window_bounds = array<i64: 16, 256>}]} {
    %c0_i32 = arith.constant 0 : i32
    %0 = arith.cmpi eq, %arg1, %c0_i32 : i32
    %1 = arith.extui %0 : i1 to i32
    %c0_i32_0 = arith.constant 0 : i32
    %2 = arith.cmpi ne, %1, %c0_i32_0 : i32
    scf.if %2 {
      %cst_18 = arith.constant 0.000000e+00 : f32
      %34 = vector.broadcast %cst_18 : f32 to vector<16x256xf32>
      %c0_19 = arith.constant 0 : index
      %c0_20 = arith.constant 0 : index
      %35 = vector.load %arg8[%c0_19, %c0_20] : memref<16x256xf32, #tpu.memory_space<vmem>>, vector<16x256xf32>
      tpu.vector_store %arg8[%c0_19, %c0_20], %34 {strides = array<i32>} : memref<16x256xf32, #tpu.memory_space<vmem>>, vector<16x256xf32>,
    } else {
    }
    %c0 = arith.constant 0 : index
    %c0_1 = arith.constant 0 : index
    %3 = vector.load %arg2[%c0, %c0_1] : memref<16x256xbf16, #tpu.memory_space<vmem>>, vector<16x256xbf16>
    %c0_2 = arith.constant 0 : index
    %c0_3 = arith.constant 0 : index
    %4 = vector.load %arg3[%c0_2, %c0_3] : memref<256x512xbf16, #tpu.memory_space<vmem>>, vector<256x512xbf16>
    %cst = arith.constant dense<0.000000e+00> : vector<16x512xf32>
    %5 = tpu.matmul %3, %4, %cst {dimension_numbers = #tpu.dot_dimension_numbers<[1], [0], [0], [1], [0, 0, 1, 1], [], []>} : vector<16x256xbf16>, vector<256x512xbf16>, vector<16x512xf32> -> vector<16x512xf32>
    %c0_4 = arith.constant 0 : index
    %c0_5 = arith.constant 0 : index
    %6 = vector.load %arg4[%c0_4, %c0_5] : memref<1x512xf32, #tpu.memory_space<vmem>>, vector<1x512xf32>
    %7 = vector.broadcast %6 : vector<1x512xf32> to vector<16x512xf32>
    %8 = arith.addf %5, %7 : vector<16x512xf32>
    %9 = vector.extract_strided_slice %8 {offsets = [0, 0], sizes = [16, 256], strides = [1, 1]} : vector<16x512xf32> to vector<16x256xf32>
    %10 = arith.mulf %9, %9 : vector<16x256xf32>
    %11 = arith.mulf %9, %10 : vector<16x256xf32>
    %cst_6 = arith.constant 4.471500e-02 : f32
    %12 = vector.broadcast %cst_6 : f32 to vector<16x256xf32>
    %13 = arith.mulf %12, %11 : vector<16x256xf32>
    %14 = arith.addf %9, %13 : vector<16x256xf32>
    %cst_7 = arith.constant 0.797884583 : f32
    %15 = vector.broadcast %cst_7 : f32 to vector<16x256xf32>
    %16 = arith.mulf %15, %14 : vector<16x256xf32>
    %17 = math.tanh %16 : vector<16x256xf32>
    %cst_8 = arith.constant 1.000000e+00 : f32
    %18 = vector.broadcast %cst_8 : f32 to vector<16x256xf32>
    %19 = arith.addf %18, %17 : vector<16x256xf32>
    %cst_9 = arith.constant 5.000000e-01 : f32
    %20 = vector.broadcast %cst_9 : f32 to vector<16x256xf32>
    %21 = arith.mulf %20, %19 : vector<16x256xf32>
    %22 = arith.mulf %9, %21 : vector<16x256xf32>
    %23 = vector.extract_strided_slice %8 {offsets = [0, 256], sizes = [16, 256], strides = [1, 1]} : vector<16x512xf32> to vector<16x256xf32>
    %24 = arith.mulf %22, %23 : vector<16x256xf32>
    %25 = arith.truncf %24 : vector<16x256xf32> to vector<16x256xbf16>
    %c0_10 = arith.constant 0 : index
    %c0_11 = arith.constant 0 : index
    %26 = vector.load %arg8[%c0_10, %c0_11] : memref<16x256xf32, #tpu.memory_space<vmem>>, vector<16x256xf32>
    %c0_12 = arith.constant 0 : index
    %c0_13 = arith.constant 0 : index
    %27 = vector.load %arg5[%c0_12, %c0_13] : memref<256x256xbf16, #tpu.memory_space<vmem>>, vector<256x256xbf16>
    %cst_14 = arith.constant dense<0.000000e+00> : vector<16x256xf32>
    %28 = tpu.matmul %25, %27, %cst_14 {dimension_numbers = #tpu.dot_dimension_numbers<[1], [0], [0], [1], [0, 0, 1, 1], [], []>} : vector<16x256xbf16>, vector<256x256xbf16>, vector<16x256xf32> -> vector<16x256xf32>
    %29 = arith.addf %26, %28 : vector<16x256xf32>
    %c0_15 = arith.constant 0 : index
    %c0_16 = arith.constant 0 : index
    %30 = vector.load %arg8[%c0_15, %c0_16] : memref<16x256xf32, #tpu.memory_space<vmem>>, vector<16x256xf32>
    tpu.vector_store %arg8[%c0_15, %c0_16], %29 {strides = array<i32>} : memref<16x256xf32, #tpu.memory_space<vmem>>, vector<16x256xf32>,
    %c1_i32 = arith.constant 1 : i32
    %31 = arith.cmpi eq, %arg1, %c1_i32 : i32
    %32 = arith.extui %31 : i1 to i32
    %c0_i32_17 = arith.constant 0 : i32
    %33 = arith.cmpi ne, %32, %c0_i32_17 : i32
    scf.if %33 {
      %c0_18 = arith.constant 0 : index
      %c0_19 = arith.constant 0 : index
      %34 = vector.load %arg8[%c0_18, %c0_19] : memref<16x256xf32, #tpu.memory_space<vmem>>, vector<16x256xf32>
      %c0_20 = arith.constant 0 : index
      %c0_21 = arith.constant 0 : index
      %35 = vector.load %arg6[%c0_20, %c0_21] : memref<1x256xf32, #tpu.memory_space<vmem>>, vector<1x256xf32>
      %36 = vector.broadcast %35 : vector<1x256xf32> to vector<16x256xf32>
      %37 = arith.addf %34, %36 : vector<16x256xf32>
      %c0_22 = arith.constant 0 : index
      %c0_23 = arith.constant 0 : index
      %38 = vector.load %arg7[%c0_22, %c0_23] : memref<16x256xf32, #tpu.memory_space<vmem>>, vector<16x256xf32>
      tpu.vector_store %arg7[%c0_22, %c0_23], %37 {strides = array<i32>} : memref<16x256xf32, #tpu.memory_space<vmem>>, vector<16x256xf32>,
    } else {
    }
    return
  }
  func.func @transform_0(%arg0: i32, %arg1: i32) -> (i32, i32) {
    %c0_i32 = arith.constant 0 : i32
    %c0_i32_0 = arith.constant 0 : i32
    return %arg0, %c0_i32 : i32, i32
  }
  func.func @transform_1(%arg0: i32, %arg1: i32) -> (i32, i32) {
    %c0_i32 = arith.constant 0 : i32
    %c0_i32_0 = arith.constant 0 : i32
    return %c0_i32, %arg1 : i32, i32
  }
  func.func @transform_2(%arg0: i32, %arg1: i32) -> (i32, i32) {
    %c0_i32 = arith.constant 0 : i32
    %c0_i32_0 = arith.constant 0 : i32
    return %c0_i32, %arg1 : i32, i32
  }
  func.func @transform_3(%arg0: i32, %arg1: i32) -> (i32, i32) {
    %c0_i32 = arith.constant 0 : i32
    %c0_i32_0 = arith.constant 0 : i32
    return %arg1, %c0_i32 : i32, i32
  }
  func.func @transform_4(%arg0: i32, %arg1: i32) -> (i32, i32) {
    %c0_i32 = arith.constant 0 : i32
    %c0_i32_0 = arith.constant 0 : i32
    %c0_i32_1 = arith.constant 0 : i32
    return %c0_i32, %c0_i32_0 : i32, i32
  }
  func.func @transform_5(%arg0: i32, %arg1: i32) -> (i32, i32) {
    %c0_i32 = arith.constant 0 : i32
    %c0_i32_0 = arith.constant 0 : i32
    return %arg0, %c0_i32 : i32, i32
  }
}

</mosaic_0001>

<bundles_post_ra>
// kernel: tpu_custom_call.1
= control target key start
LH: loop header
LB: loop body
LE: loop exit
PB: predicated region body
PF: predicated region fallthrough
CT: control target
= control target key end

     0   :  { %s2325_s0 = inlined_call_operand.hbm [shape: bf16[16,256], index: 0, kind: input, shape index: {}]   ;;  %s2326_s1 = inlined_call_operand.hbm [shape: bf16[256,1024], index: 1, kind: input, shape index: {}]   ;;  %s2327_s2 = inlined_call_operand.hbm [shape: f32[1,1024], index: 2, kind: input, shape index: {}]   ;;  %s2328_s3 = inlined_call_operand.hbm [shape: bf16[512,256], index: 3, kind: input, shape index: {}]   ;;  %s2329_s4 = inlined_call_operand.vmem [shape: f32[1,256], index: 4, kind: input, shape index: {}]   ;;  %s2330_s5 = inlined_call_operand.hbm [shape: f32[16,256], index: 5, kind: output, shape index: {}]  }
   0x1   :  { %2339 = sst [smem:[#allocation18_spill]] %s2326_s1 }
   0x2   :  { %10 = vsyncpa [#allocation4], 0 }
   0x3   :  { %11 = vsyncpa [#allocation7], 0 }
   0x4   :  { %13 = vsyncpa [#allocation7 + $0x1], 0 }
   0x5   :  { %14 = vsyncpa [#allocation10], 0 }
   0x6   :  { %16 = vsyncpa [#allocation10 + $0x1], 0 }
   0x7   :  { %17 = vsyncpa [#allocation5], 0  ;;  %s1937_s18 = smov 0   ;;  %s1939_s19 = smov 0  }
   0x8   :  { %s1941_s20 = smov 0   ;;  %s1943_s21 = smov 0  }
   0x9   :  { %s1945_s22 = smov 0   ;;  %s1947_s23 = smov 0  }
   0xa LB: > { %s32_s24 = sadd.s32 1, %s1888_s22  ;;  %s68_s25 = sadd.s32 1, %s1880_s20  ;;  %s1892_s23 = sphi %s1947_s23, %s23_s23   ;;  %s1888_s22 = sphi %s1945_s22, %s2360_s22   ;;  %s1884_s21 = sphi %s1943_s21, %s2359_s21   ;;  %s1880_s20 = sphi %s1941_s20, %s2358_s20   ;;  %s1876_s19 = sphi %s1939_s19, %s2357_s19   ;;  %s1872_s18 = sphi %s1937_s18, %s2356_s18  }
   0xb   : > { %p33_p0 = scmp.ge.s32.totalorder %s32_s24, 2  ;;  %p75_p1 = scmp.ne.s32.totalorder %s1880_s20, %s1876_s19 }
   0xc   : > { %p76_p2 = scmp.eq.s32.totalorder %s1892_s23, 0  ;;  %p1469_p4 = scmp.lt.s32.totalorder %s1892_s23, 2 }
   0xd   : > { %s2362_s24 = smov (%p33_p0, %s32_s24), 0  ;;  %s224_s27 = sand.u32 1, %s1892_s23  }
   0xe   : > { %2340 = sst [smem:[#allocation16_spill]] %s2362_s24  ;;  %p77_p3 = por %p76_p2, %p75_p1 }
   0xf   : > { %s65_s26 = ssub.s32 %s1888_s22, %s2362_s24  ;;  %s1979_s28 = sand.u32 1, %s1880_s20  }
  0x10   : > { %p66_p5 = scmp.eq.s32.totalorder %s65_s26, 0  ;;  %s1436_s29 = sshll.u32 %s1888_s22, 8 }
  0x11   : > { %s1317_s6 = sshll.u32 %s1979_s28, 9  ;;  %s2342_s1 = sld [smem:[#allocation18_spill]] }
  0x12   : > { %s1983_s30 = scalar_select %p66_p5, %s1880_s20, %s68_s25  }
  0x13   : > { %p1991_p6 = pnand %p1469_p4, %p77_p3  ;;  %s228_s11 = scalar_lea.vmem [#allocation6], %s1317_s6 }
  0x14   : > { %2341 = sst [smem:[#allocation17_spill]] %s1983_s30  ;;  %s235_s12 = sshll.u32 %s228_s11, 4  ;;  %s1995_s12 = int_to_ptr.vmem [resolvable:$true] %s235_s12 }
  0x15   : > { %s2343_s10 = scalar_select %p1991_p6, 1, 0 }
  0x16   : > { %s1997_s13 = scalar_lea.sflag [#allocation7], %s224_s27  ;;  %p2003_p8 = pneg %p1991_p6 }
  0x17   : > { %s1989_s9 = scalar_lea.hbm %s2342_s1, %s1436_s29  ;;  %s1691_s25 = scalar_lea.hbm %s2342_s1, 16384 }
  0x18   : > { %s1686_s14 = scalar_lea.hbm %s1989_s9, 8192  ;;  %p1692_p11 = scmp.lt.u32.totalorder %s1989_s9, %s2342_s1 }
  0x19   : > { %p1687_p7 = scmp.ne.s32.totalorder %s1989_s9, %s1686_s14  ;;  %p1693_p12 = scmp.lt.u32.totalorder %s1691_s25, %s1686_s14 }
  0x1a   : > { %s2344_s15 = scalar_select %p2003_p8, 1, 0 }
  0x1b   : > { %p1689_p9 = pnand %p2003_p8, %p1687_p7  ;;  %p1694_p13 = por %p1693_p12, %p1692_p11 }
  0x1c   : > { %p1695_p0 = scmp.lt.u32.totalorder %s1686_s14, %s1989_s9 }
  0x1d   : > { %p1690_p10 = pneg %p1689_p9 }
  0x1e   : > { %p1696_p1 = por %p1695_p0, %p1694_p13 }
  0x20   : > { %p1697_p2 = pnand %p1696_p1, %p1690_p10 }
  0x22   : > { %1700 = shalt.err (!%p1697_p2)
}
  0x23   : > { %s1701_s27 = scalar_lea.vmem %s1995_s12, 8192  ;;  %s1894_s6 = smov [#allocation6]  }
  0x24   : > { %p1702_p3 = scmp.ne.s32.totalorder %s1995_s12, %s1701_s27  ;;  %s1706_s7 = sshll.u32 %s1894_s6, 4  ;;  %s1707_s7 = int_to_ptr.vmem [resolvable:$false] %s1706_s7 }
  0x25   : > { %s1708_s8 = scalar_lea.vmem %s1707_s7, 16384  ;;  %p1709_p7 = scmp.lt.s32.totalorder %s1995_s12, %s1707_s7 }
  0x26   : > { %p1704_p4 = pnand %p1702_p3, %p2003_p8  ;;  %p1710_p9 = scmp.lt.s32.totalorder %s1708_s8, %s1701_s27 }
  0x28   : > { %p1705_p5 = pneg %p1704_p4  ;;  %p1711_p11 = por %p1710_p9, %p1709_p7 }
  0x2a   : > { %p1712_p12 = pnand %p1711_p11, %p1705_p5 }
  0x2c   : > { %1715 = shalt.err (!%p1712_p12)
}
  0x2d   : > { %s1895_s11 = smov 512   ;;  %s1896_s14 = smov 256  }
  0x2e   : > { %s1897_s16 = smov 16   ;;  %s2028_s17 = sadd.s32 4294967295, %s1892_s23  }
  0x2f   : > { %1461 = dma.hbm_to_vmem [thread:$0]  (!%p1991_p6), %s1989_s9, 8192, %s1995_s12, %s1997_s13, %s1895_s11, %s1896_s14, %s1897_s16  }
  0x30   : > { %p81_p10 = scmp.ne.s32.totalorder %s1876_s19, %s1872_s18  ;;  %p2332_p13 = scmp.eq.s32.totalorder %s2028_s17, 0 }
  0x31   : > { %p1314_p0 = scmp.ge.s32.totalorder %s1892_s23, 1  ;;  %p191_p1 = scmp.lt.s32.totalorder %s1892_s23, 3 }
  0x32   : > { %p2037_p2 = por %p2332_p13, %p81_p10  ;;  %s1898_s9 = smov [#allocation3]  }
  0x33   : > { %p2041_p3 = pnand %p1314_p0, %p191_p1  ;;  %s207_s12 = sshll.u32 %s1898_s9, 4  ;;  %s2045_s12 = int_to_ptr.vmem [resolvable:$true] %s207_s12 }
  0x34   : > { %s2345_s25 = scalar_select %p2037_p2, 1, 0 }
  0x35   : > { %s2346_s26 = scalar_select %p2041_p3, 1, 0 }
  0x36   : > { %p1454_p4 = pneg %p2041_p3  ;;  %s1320_s18 = sshll.u32 %s1979_s28, 2 }
  0x37   : > { %s1437_s29 = sshll.u32 %s1888_s22, 6  ;;  %s249_s11 = scalar_lea.vmem [#allocation8], %s1320_s18 }
  0x38   : > { %p2053_p5 = pnand %p1454_p4, %p2332_p13  ;;  %s2060_s8 = scalar_lea.hbm %s2327_s2, %s1437_s29 }
  0x39   : > { %s257_s14 = sshll.u32 %s249_s11, 4  ;;  %s1716_s1 = scalar_lea.hbm %s2325_s0, 256  ;;  %s2062_s14 = int_to_ptr.vmem [resolvable:$true] %s257_s14 }
  0x3a   : > { %p1717_p7 = scmp.ne.s32.totalorder %s2325_s0, %s1716_s1  ;;  %p1718_p9 = pneg %p2053_p5 }
  0x3b   : > { %p1723_p10 = scmp.lt.u32.totalorder %s1716_s1, %s2325_s0 }
  0x3c   : > { %p1719_p11 = pnand %p1718_p9, %p1717_p7 }
  0x3e   : > { %p1720_p12 = pneg %p1719_p11 }
  0x40   : > { %p1725_p0 = pnand %p1723_p10, %p1720_p12 }
  0x42   : > { %1728 = shalt.err (!%p1725_p0)
}
  0x43   : > { %s1729_s18 = scalar_lea.vmem %s2045_s12, 256  ;;  %p1737_p2 = scmp.lt.s32.totalorder %s2045_s12, %s2045_s12 }
  0x44   : > { %p1730_p1 = scmp.ne.s32.totalorder %s2045_s12, %s1729_s18  ;;  %p1738_p3 = scmp.lt.s32.totalorder %s1729_s18, %s1729_s18 }
  0x46   : > { %p1732_p4 = pnand %p1730_p1, %p1718_p9  ;;  %p1739_p6 = por %p1738_p3, %p1737_p2 }
  0x48   : > { %p1733_p13 = pneg %p1732_p4 }
  0x4a   : > { %p1740_p8 = pnand %p1739_p6, %p1733_p13 }
  0x4c   : > { %1743 = shalt.err (!%p1740_p8)
}
  0x4d   : > { %s1899_s24 = smov 128   ;;  %s1900_s1 = smov 8  }
  0x4e   : > { %1457 = dma.hbm_to_vmem [thread:$0]  (!%p2053_p5), %s2325_s0, 256, %s2045_s12, [#allocation4], %s1899_s24, %s1899_s24, %s1900_s1  }
  0x4f   : > { %s1744_s11 = scalar_lea.hbm %s2060_s8, 64  ;;  %p2348_p8 = scmp.ne.s32.totalorder %s2344_s15, 0 }
  0x50   : > { %p1745_p6 = scmp.ne.s32.totalorder %s2060_s8, %s1744_s11  ;;  %s1749_s6 = scalar_lea.hbm %s2327_s2, 128 }
  0x51   : > { %p1750_p3 = scmp.lt.u32.totalorder %s2060_s8, %s2327_s2  ;;  %p1751_p7 = scmp.lt.u32.totalorder %s1749_s6, %s1744_s11 }
  0x52   : > { %p1747_p13 = pnand %p1745_p6, %p2348_p8  ;;  %p1753_p11 = scmp.lt.u32.totalorder %s1744_s11, %s2060_s8 }
  0x53   : > { %p1752_p9 = por %p1751_p7, %p1750_p3 }
  0x54   : > { %p1748_p2 = pneg %p1747_p13 }
  0x55   : > { %p1754_p12 = por %p1753_p11, %p1752_p9 }
  0x57   : > { %p1755_p10 = pnand %p1754_p12, %p1748_p2 }
  0x59   : > { %1758 = shalt.err (!%p1755_p10)
}
  0x5a   : > { %s1759_s12 = scalar_lea.vmem %s2062_s14, 64  ;;  %s1901_s27 = smov [#allocation8]  }
  0x5b   : > { %p1760_p5 = scmp.ne.s32.totalorder %s2062_s14, %s1759_s12  ;;  %s1764_s30 = sshll.u32 %s1901_s27, 4  ;;  %s1765_s30 = int_to_ptr.vmem [resolvable:$false] %s1764_s30 }
  0x5c   : > { %s1766_s29 = scalar_lea.vmem %s1765_s30, 128  ;;  %p1767_p4 = scmp.lt.s32.totalorder %s2062_s14, %s1765_s30 }
  0x5d   : > { %p1762_p0 = pnand %p1760_p5, %p2348_p8  ;;  %p1768_p6 = scmp.lt.s32.totalorder %s1766_s29, %s1759_s12 }
  0x5f   : > { %p1763_p1 = pneg %p1762_p0  ;;  %p1769_p13 = por %p1768_p6, %p1767_p4 }
  0x61   : > { %p1770_p3 = pnand %p1769_p13, %p1763_p1 }
  0x63   : > { %1773 = shalt.err (!%p1770_p3)
}
  0x64   : > { %p2349_p2 = scmp.ne.s32.totalorder %s2343_s10, 0  ;;  %s1323_s11 = sshll.u32 %s1979_s28, 8 }
  0x65   : > { %s1439_s16 = sshll.u32 %s1888_s22, 12  ;;  %s268_s18 = scalar_lea.vmem [#allocation9], %s1323_s11 }
  0x66   : > { %1464 = dma.hbm_to_vmem [thread:$0]  (!%p2349_p2), %s2060_s8, 64, %s2062_s14, %s1997_s13  }
  0x67   : > { %s2115_s7 = scalar_lea.hbm %s2328_s3, %s1439_s16  ;;  %s276_s12 = sshll.u32 %s268_s18, 4  ;;  %s2117_s12 = int_to_ptr.vmem [resolvable:$true] %s276_s12 }
  0x68   : > { %s265_s27 = scalar_lea.sflag [#allocation10], %s1979_s28  ;;  %s1774_s30 = scalar_lea.hbm %s2115_s7, 4096 }
  0x69   : > { %p1775_p7 = scmp.ne.s32.totalorder %s2115_s7, %s1774_s30  ;;  %s1779_s14 = scalar_lea.hbm %s2328_s3, 8192 }
  0x6a   : > { %p1780_p12 = scmp.lt.u32.totalorder %s2115_s7, %s2328_s3  ;;  %p1781_p10 = scmp.lt.u32.totalorder %s1779_s14, %s1774_s30 }
  0x6b   : > { %p1777_p9 = pnand %p1775_p7, %p2348_p8  ;;  %p1783_p0 = scmp.lt.u32.totalorder %s1774_s30, %s2115_s7 }
  0x6c   : > { %p1782_p5 = por %p1781_p10, %p1780_p12 }
  0x6d   : > { %p1778_p11 = pneg %p1777_p9 }
  0x6e   : > { %p1784_p1 = por %p1783_p0, %p1782_p5 }
  0x70   : > { %p1785_p4 = pnand %p1784_p1, %p1778_p11 }
  0x72   : > { %1788 = shalt.err (!%p1785_p4)
}
  0x73   : > { %s1789_s11 = scalar_lea.vmem %s2117_s12, 4096  ;;  %s1902_s9 = smov [#allocation9]  }
  0x74   : > { %p1790_p6 = scmp.ne.s32.totalorder %s2117_s12, %s1789_s11  ;;  %s1794_s6 = sshll.u32 %s1902_s9, 4  ;;  %s1795_s6 = int_to_ptr.vmem [resolvable:$false] %s1794_s6 }
  0x75   : > { %s1796_s18 = scalar_lea.vmem %s1795_s6, 8192  ;;  %p1797_p7 = scmp.lt.s32.totalorder %s2117_s12, %s1795_s6 }
  0x76   : > { %p1792_p13 = pnand %p1790_p6, %p2348_p8  ;;  %p1798_p9 = scmp.lt.s32.totalorder %s1796_s18, %s1789_s11 }
  0x78   : > { %p1793_p3 = pneg %p1792_p13  ;;  %p1799_p12 = por %p1798_p9, %p1797_p7 }
  0x7a   : > { %p1800_p10 = pnand %p1799_p12, %p1793_p3 }
  0x7c   : > { %1803 = shalt.err (!%p1800_p10)
}
  0x7d   : > { %1467 = dma.hbm_to_vmem [thread:$0]  (!%p2349_p2), %s2115_s7, 4096, %s2117_s12, %s265_s27, %s1899_s24, %s1899_s24, %s1900_s1  }
  0x7e   : > { %p2350_p8 = scmp.ne.s32.totalorder %s2346_s26, 0 }
  0x7f   : > { %p2351_p11 = scmp.eq.s32.totalorder (!%p2350_p8), %s2028_s17, 0 }
  0x80   : > { %288 = sbr.rel (%p2350_p8) target bundleno = 722 (0x2d2), region = 40 }
  0x87   : > { %1855 = dma.done.wait (%p2351_p11), [#allocation4], 256   ;;  %p2352_p5 = pmov %p2351_p11 }
  0x88   : > { %s294_s10 = sand.u32 1, %s2028_s17   ;;  %s296_s15 = sand.u32 1, %s1876_s19  }
  0x89   : > { %1857 = vsyncadd (%p2352_p5), [#allocation4], 4294967040  ;;  %s1329_s30 = sshll.u32 %s296_s15, 9  ;;  %s295_s13 = scalar_lea.sflag [#allocation7], %s294_s10 }
  0x8a   : > { %s2154_s28 = scalar_lea.vmem [#allocation6], %s1329_s30  ;;  %p2353_p0 = scmp.ne.s32.totalorder %s2345_s25, 0 }
  0x8c   : > { %1859 = dma.done.wait (%p2353_p0), %s295_s13, 8256  }
  0x8d   : > { %1861 = vsyncadd (%p2353_p0), %s295_s13, 4294959040  ;;  %s1330_s26 = sshll.u32 %s296_s15, 2  ;;  %s1331_s24 = sshll.u32 %s296_s15, 8 }
  0x8e   : > { %s2160_s1 = scalar_lea.vmem [#allocation8], %s1330_s26  ;;  %s313_s7 = scalar_lea.sflag [#allocation10], %s296_s15 }
  0x8f   : > { %s2162_s12 = scalar_lea.vmem [#allocation9], %s1331_s24 }
  0x90   : > { %1863 = dma.done.wait (%p2353_p0), %s313_s7, 4096  }
  0x91   : > { %1865 = vsyncadd (%p2353_p0), %s313_s7, 4294963200  ;;  %p1332_p2 = scmp.ne.s32.totalorder %s1884_s21, 0 }
  0x92   : > { %v1903_v0 = vmov (!%p1332_p2), 0.0  }
  0x93   : > { %356 = sbr.rel (%p1332_p2) target bundleno = 154 (0x9a), region = 60  ;;  %357 = vst [vmem:[#allocation2] sm:$0xff] (!%p1332_p2), %v1903_v0  ;;  %358 = vst [vmem:[#allocation2 + $0x8] sm:$0xff] (!%p1332_p2), %v1903_v0 }
  0x94   : > { %359 = vst [vmem:[#allocation2 + $0x10] sm:$0xff] (!%p1332_p2), %v1903_v0  ;;  %360 = vst [vmem:[#allocation2 + $0x18] sm:$0xff] (!%p1332_p2), %v1903_v0 }
  0x9a PF: > { %v1531_v1 = vld [vmem:[%s2154_s28 + $0x4] ss:$16 sps:$4 sm:$0xff]   ;;  %v1533_v2 = vld [vmem:[%s2154_s28] ss:$16 sps:$4 sm:$0xff]   ;;  %v1551_v8 = vld [vmem:[%s2154_s28 + $0xc] ss:$16 sps:$4 sm:$0xff]  }
  0x9b   : > { %779 = vmatprep.subr.bf16.mxu0 %v1531_v1  ;;  %v1534_v3 = vld [vmem:[%s2154_s28 + $0x24] ss:$16 sps:$4 sm:$0xff]   ;;  %v1536_v4 = vld [vmem:[%s2154_s28 + $0x20] ss:$16 sps:$4 sm:$0xff]   ;;  %v1554_v9 = vld [vmem:[%s2154_s28 + $0x8] ss:$16 sps:$4 sm:$0xff]   ;;  %822 = vmatprep.subr.bf16.mxu1 %v1551_v8 }
  0x9c   : > { %780 = vmatpush1.bf16.msra.mxu0 %v1533_v2  ;;  %v1537_v5 = vld [vmem:[%s2154_s28 + $0x44] ss:$16 sps:$4 sm:$0xff]   ;;  %v1539_v6 = vld [vmem:[%s2154_s28 + $0x40] ss:$16 sps:$4 sm:$0xff]   ;;  %823 = vmatpush1.bf16.msra.mxu1 %v1554_v9  ;;  %v1557_v12 = vld [vmem:[%s2154_s28 + $0x2c] ss:$16 sps:$4 sm:$0xff]  }
  0x9d   : > { %781 = vmatprep.subr.bf16.mxu0 %v1534_v3  ;;  %v1540_v7 = vld [vmem:[%s2154_s28 + $0x64] ss:$16 sps:$4 sm:$0xff]   ;;  %v1542_v10 = vld [vmem:[%s2154_s28 + $0x60] ss:$16 sps:$4 sm:$0xff]   ;;  %v1560_v13 = vld [vmem:[%s2154_s28 + $0x28] ss:$16 sps:$4 sm:$0xff]   ;;  %824 = vmatprep.subr.bf16.mxu1 %v1557_v12 }
  0x9e   : > { %v1543_v11 = vld [vmem:[%s2154_s28 + $0x84] ss:$16 sps:$4 sm:$0xff]   ;;  %v1545_v14 = vld [vmem:[%s2154_s28 + $0x80] ss:$16 sps:$4 sm:$0xff]   ;;  %v1563_v16 = vld [vmem:[%s2154_s28 + $0x4c] ss:$16 sps:$4 sm:$0xff]  }
  0x9f   : > { %v1546_v15 = vld [vmem:[%s2154_s28 + $0xa4] ss:$16 sps:$4 sm:$0xff]   ;;  %v1566_v17 = vld [vmem:[%s2154_s28 + $0x48] ss:$16 sps:$4 sm:$0xff]   ;;  %v1569_v18 = vld [vmem:[%s2154_s28 + $0x6c] ss:$16 sps:$4 sm:$0xff]  }
  0xa0   : > { %782 = vmatpush1.bf16.msra.mxu0 %v1536_v4  ;;  %825 = vmatpush1.bf16.msra.mxu1 %v1560_v13  ;;  %v1548_v19 = vld [vmem:[%s2154_s28 + $0xa0] ss:$16 sps:$4 sm:$0xff]   ;;  %v1549_v20 = vld [vmem:[%s2154_s28 + $0xc4] ss:$16 sps:$4 sm:$0xff]   ;;  %v1572_v21 = vld [vmem:[%s2154_s28 + $0x68] ss:$16 sps:$4 sm:$0xff]  }
  0xa1   : > { %783 = vmatprep.subr.bf16.mxu0 %v1537_v5  ;;  %826 = vmatprep.subr.bf16.mxu1 %v1563_v16  ;;  %v1575_v22 = vld [vmem:[%s2154_s28 + $0x8c] ss:$16 sps:$4 sm:$0xff]   ;;  %v1553_v23 = vld [vmem:[%s2154_s28 + $0xc0] ss:$16 sps:$4 sm:$0xff]   ;;  %v1555_v24 = vld [vmem:[%s2154_s28 + $0xe4] ss:$16 sps:$4 sm:$0xff]  }
  0xa2   : > { %v1578_v25 = vld [vmem:[%s2154_s28 + $0x88] ss:$16 sps:$4 sm:$0xff]   ;;  %v1581_v26 = vld [vmem:[%s2154_s28 + $0xac] ss:$16 sps:$4 sm:$0xff]   ;;  %v1559_v27 = vld [vmem:[%s2154_s28 + $0xe0] ss:$16 sps:$4 sm:$0xff]  }
  0xa3   : > { %v1561_v28 = vld [vmem:[%s2154_s28 + $0x104] ss:$16 sps:$4 sm:$0xff]   ;;  %v1584_v29 = vld [vmem:[%s2154_s28 + $0xa8] ss:$16 sps:$4 sm:$0xff]   ;;  %v1587_v30 = vld [vmem:[%s2154_s28 + $0xcc] ss:$16 sps:$4 sm:$0xff]  }
  0xa4   : > { %784 = vmatpush1.bf16.msra.mxu0 %v1539_v6  ;;  %827 = vmatpush1.bf16.msra.mxu1 %v1566_v17  ;;  %v1565_v31 = vld [vmem:[%s2154_s28 + $0x100] ss:$16 sps:$4 sm:$0xff]   ;;  %v1567_v32 = vld [vmem:[%s2154_s28 + $0x124] ss:$16 sps:$4 sm:$0xff]   ;;  %v1590_v33 = vld [vmem:[%s2154_s28 + $0xc8] ss:$16 sps:$4 sm:$0xff]  }
  0xa5   : > { %785 = vmatprep.subr.bf16.mxu0 %v1540_v7  ;;  %828 = vmatprep.subr.bf16.mxu1 %v1569_v18  ;;  %v1593_v34 = vld [vmem:[%s2154_s28 + $0xec] ss:$16 sps:$4 sm:$0xff]   ;;  %v1571_v35 = vld [vmem:[%s2154_s28 + $0x120] ss:$16 sps:$4 sm:$0xff]   ;;  %v1573_v36 = vld [vmem:[%s2154_s28 + $0x144] ss:$16 sps:$4 sm:$0xff]  }
  0xa6   : > { %v1611_v37 = vld [vmem:[#allocation3 + $0x4] ss:$8 sps:$4 sm:$0xff]   ;;  %v1596_v38 = vld [vmem:[%s2154_s28 + $0xe8] ss:$16 sps:$4 sm:$0xff]   ;;  %v1577_v40 = vld [vmem:[%s2154_s28 + $0x140] ss:$16 sps:$4 sm:$0xff]  }
  0xa7   : > { %v1599_v39 = vld [vmem:[%s2154_s28 + $0x10c] ss:$16 sps:$4 sm:$0xff]   ;;  %811 = vmatprep.mubr.bf16.mxu0 %v1611_v37  ;;  %854 = vmatprep.mubr.bf16.mxu1 %v1611_v37  ;;  %v1579_v41 = vld [vmem:[%s2154_s28 + $0x164] ss:$16 sps:$4 sm:$0xff]   ;;  %v1602_v42 = vld [vmem:[%s2154_s28 + $0x108] ss:$16 sps:$4 sm:$0xff]  }
  0xa8   : > { %786 = vmatpush1.bf16.msra.mxu0 %v1542_v10  ;;  %829 = vmatpush1.bf16.msra.mxu1 %v1572_v21  ;;  %v1605_v43 = vld [vmem:[%s2154_s28 + $0x12c] ss:$16 sps:$4 sm:$0xff]   ;;  %v1583_v44 = vld [vmem:[%s2154_s28 + $0x160] ss:$16 sps:$4 sm:$0xff]   ;;  %v1585_v45 = vld [vmem:[%s2154_s28 + $0x184] ss:$16 sps:$4 sm:$0xff]  }
  0xa9   : > { %787 = vmatprep.subr.bf16.mxu0 %v1543_v11  ;;  %830 = vmatprep.subr.bf16.mxu1 %v1575_v22  ;;  %v1608_v46 = vld [vmem:[%s2154_s28 + $0x128] ss:$16 sps:$4 sm:$0xff]   ;;  %v1612_v47 = vld [vmem:[%s2154_s28 + $0x14c] ss:$16 sps:$4 sm:$0xff]   ;;  %v1589_v48 = vld [vmem:[%s2154_s28 + $0x180] ss:$16 sps:$4 sm:$0xff]  }
  0xaa   : > { %v1591_v49 = vld [vmem:[%s2154_s28 + $0x1a4] ss:$16 sps:$4 sm:$0xff]   ;;  %v1614_v50 = vld [vmem:[%s2154_s28 + $0x148] ss:$16 sps:$4 sm:$0xff]   ;;  %v1615_v51 = vld [vmem:[%s2154_s28 + $0x16c] ss:$16 sps:$4 sm:$0xff]  }
  0xab   : > { %v1595_v52 = vld [vmem:[%s2154_s28 + $0x1a0] ss:$16 sps:$4 sm:$0xff]   ;;  %v1597_v53 = vld [vmem:[%s2154_s28 + $0x1c4] ss:$16 sps:$4 sm:$0xff]   ;;  %v1617_v54 = vld [vmem:[%s2154_s28 + $0x168] ss:$16 sps:$4 sm:$0xff]  }
  0xac   : > { %788 = vmatpush1.bf16.msra.mxu0 %v1545_v14  ;;  %831 = vmatpush1.bf16.msra.mxu1 %v1578_v25  ;;  %v1601_v55 = vld [vmem:[%s2154_s28 + $0x1c0] ss:$16 sps:$4 sm:$0xff]   ;;  %v1618_v56 = vld [vmem:[%s2154_s28 + $0x18c] ss:$16 sps:$4 sm:$0xff]   ;;  %v1603_v57 = vld [vmem:[%s2154_s28 + $0x1e4] ss:$16 sps:$4 sm:$0xff]  }
  0xad   : > { %789 = vmatprep.subr.bf16.mxu0 %v1546_v15  ;;  %832 = vmatprep.subr.bf16.mxu1 %v1581_v26  ;;  %v1620_v58 = vld [vmem:[%s2154_s28 + $0x188] ss:$16 sps:$4 sm:$0xff]   ;;  %v1621_v59 = vld [vmem:[%s2154_s28 + $0x1ac] ss:$16 sps:$4 sm:$0xff]   ;;  %v1607_v60 = vld [vmem:[%s2154_s28 + $0x1e0] ss:$16 sps:$4 sm:$0xff]  }
  0xae   : > { %v1623_v61 = vld [vmem:[%s2154_s28 + $0x1a8] ss:$16 sps:$4 sm:$0xff]   ;;  %v1632_v62 = vld [vmem:[%s2162_s12 + $0x4] ss:$8 sps:$4 sm:$0xff]   ;;  %v1635_v3 = vld [vmem:[%s2162_s12 + $0x14] ss:$8 sps:$4 sm:$0xff]  }
  0xaf   : > { %v1624_v63 = vld [vmem:[%s2154_s28 + $0x1cc] ss:$16 sps:$4 sm:$0xff]   ;;  %v1609_v0 = vld [vmem:[#allocation3] ss:$8 sps:$4 sm:$0xff]   ;;  %p1431_p1 = scmp.ne.s32.totalorder %s1884_s21, 1 }
  0xb0   : > { %790 = vmatpush1.bf16.msra.mxu0 %v1548_v19  ;;  %833 = vmatpush1.bf16.msra.mxu1 %v1584_v29  ;;  %v1630_v1 = vld [vmem:[%s2162_s12] ss:$8 sps:$4 sm:$0xff]   ;;  %v1627_v4 = vld [vmem:[%s2154_s28 + $0x1ec] ss:$16 sps:$4 sm:$0xff]   ;;  %v1633_v5 = vld [vmem:[%s2162_s12 + $0x10] ss:$8 sps:$4 sm:$0xff]  }
  0xb1   : > { %791 = vmatprep.subr.bf16.mxu0 %v1549_v20  ;;  %834 = vmatprep.subr.bf16.mxu1 %v1587_v30  ;;  %v1626_v2 = vld [vmem:[%s2154_s28 + $0x1c8] ss:$16 sps:$4 sm:$0xff]   ;;  %v1638_v7 = vld [vmem:[%s2162_s12 + $0x24] ss:$8 sps:$4 sm:$0xff]   ;;  %v1641_v9 = vld [vmem:[%s2162_s12 + $0x34] ss:$8 sps:$4 sm:$0xff]  }
  0xb2   : > { %v1629_v6 = vld [vmem:[%s2154_s28 + $0x1e8] ss:$16 sps:$4 sm:$0xff]   ;;  %v1644_v11 = vld [vmem:[%s2162_s12 + $0x44] ss:$8 sps:$4 sm:$0xff]   ;;  %v1647_v13 = vld [vmem:[%s2162_s12 + $0x54] ss:$8 sps:$4 sm:$0xff]  }
  0xb3   : > { %v1636_v8 = vld [vmem:[%s2162_s12 + $0x20] ss:$8 sps:$4 sm:$0xff]   ;;  %v1639_v10 = vld [vmem:[%s2162_s12 + $0x30] ss:$8 sps:$4 sm:$0xff]   ;;  %v1650_v15 = vld [vmem:[%s2162_s12 + $0x64] ss:$8 sps:$4 sm:$0xff]  }
  0xb4   : > { %792 = vmatpush1.bf16.msra.mxu0 %v1553_v23  ;;  %835 = vmatpush1.bf16.msra.mxu1 %v1590_v33  ;;  %v1642_v12 = vld [vmem:[%s2162_s12 + $0x40] ss:$8 sps:$4 sm:$0xff]   ;;  %v1645_v14 = vld [vmem:[%s2162_s12 + $0x50] ss:$8 sps:$4 sm:$0xff]   ;;  %v1653_v17 = vld [vmem:[%s2162_s12 + $0x74] ss:$8 sps:$4 sm:$0xff]  }
  0xb5   : > { %793 = vmatprep.subr.bf16.mxu0 %v1555_v24  ;;  %836 = vmatprep.subr.bf16.mxu1 %v1593_v34  ;;  %v1648_v16 = vld [vmem:[%s2162_s12 + $0x60] ss:$8 sps:$4 sm:$0xff]   ;;  %v1651_v18 = vld [vmem:[%s2162_s12 + $0x70] ss:$8 sps:$4 sm:$0xff]   ;;  %v1656_v19 = vld [vmem:[%s2162_s12 + $0x84] ss:$8 sps:$4 sm:$0xff]  }
  0xb6   : > { %v1654_v20 = vld [vmem:[%s2162_s12 + $0x80] ss:$8 sps:$4 sm:$0xff]   ;;  %v1659_v21 = vld [vmem:[%s2162_s12 + $0x94] ss:$8 sps:$4 sm:$0xff]   ;;  %v1657_v22 = vld [vmem:[%s2162_s12 + $0x90] ss:$8 sps:$4 sm:$0xff]  }
  0xb7   : > { %v1662_v23 = vld [vmem:[%s2162_s12 + $0xa4] ss:$8 sps:$4 sm:$0xff]   ;;  %v1660_v24 = vld [vmem:[%s2162_s12 + $0xa0] ss:$8 sps:$4 sm:$0xff]   ;;  %v1663_v25 = vld [vmem:[%s2162_s12 + $0xb0] ss:$8 sps:$4 sm:$0xff]  }
  0xb8   : > { %794 = vmatpush1.bf16.msra.mxu0 %v1559_v27  ;;  %837 = vmatpush1.bf16.msra.mxu1 %v1596_v38  ;;  %v1665_v26 = vld [vmem:[%s2162_s12 + $0xb4] ss:$8 sps:$4 sm:$0xff]   ;;  %v1668_v27 = vld [vmem:[%s2162_s12 + $0xc4] ss:$8 sps:$4 sm:$0xff]   ;;  %v1669_v30 = vld [vmem:[%s2162_s12 + $0xd0] ss:$8 sps:$4 sm:$0xff]  }
  0xb9   : > { %795 = vmatprep.subr.bf16.mxu0 %v1561_v28  ;;  %838 = vmatprep.subr.bf16.mxu1 %v1599_v39  ;;  %v1666_v28 = vld [vmem:[%s2162_s12 + $0xc0] ss:$8 sps:$4 sm:$0xff]   ;;  %v1671_v29 = vld [vmem:[%s2162_s12 + $0xd4] ss:$8 sps:$4 sm:$0xff]   ;;  %v1675_v34 = vld [vmem:[%s2162_s12 + $0xf0] ss:$8 sps:$4 sm:$0xff]  }
  0xba   : > { %v1677_v33 = vld [vmem:[%s2162_s12 + $0xf4] ss:$8 sps:$4 sm:$0xff]  }
  0xbb   : > { %v427_v38 = vld [vmem:[%s2160_s1] sm:$0xf] }
  0xbc   : > { %796 = vmatpush1.bf16.msra.mxu0 %v1565_v31  ;;  %839 = vmatpush1.bf16.msra.mxu1 %v1602_v42  ;;  %v1674_v31 = vld [vmem:[%s2162_s12 + $0xe4] ss:$8 sps:$4 sm:$0xff]  }
  0xbd   : > { %797 = vmatprep.subr.bf16.mxu0 %v1567_v32  ;;  %840 = vmatprep.subr.bf16.mxu1 %v1605_v43  ;;  %v1672_v32 = vld [vmem:[%s2162_s12 + $0xe0] ss:$8 sps:$4 sm:$0xff]  }
  0xc0   : > { %798 = vmatpush1.bf16.msra.mxu0 %v1571_v35  ;;  %841 = vmatpush1.bf16.msra.mxu1 %v1608_v46  ;;  %v429_v35 = vlaneseq }
  0xc1   : > { %799 = vmatprep.subr.bf16.mxu0 %v1573_v36  ;;  %842 = vmatprep.subr.bf16.mxu1 %v1612_v47 }
  0xc2   : > { %v2265_v36 = vshrl.u32 %v429_v35, 7 }
  0xc4   : > { %800 = vmatpush1.bf16.msra.mxu0 %v1577_v40  ;;  %843 = vmatpush1.bf16.msra.mxu1 %v1614_v50  ;;  %v431_v37 = vsub.s32 0, %v2265_v36  ;;  %v435_v39 = vsub.s32 1, %v2265_v36 }
  0xc5   : > { %801 = vmatprep.subr.bf16.mxu0 %v1579_v41  ;;  %844 = vmatprep.subr.bf16.mxu1 %v1615_v51 }
  0xc6   : > { %v432_v40 = vrot.slane %v427_v38, %v431_v37  ;;  %v436_v41 = vrot.slane %v427_v38, %v435_v39 }
  0xc8   : > { %802 = vmatpush1.bf16.msra.mxu0 %v1583_v44  ;;  %845 = vmatpush1.bf16.msra.mxu1 %v1617_v54 }
  0xc9   : > { %803 = vmatprep.subr.bf16.mxu0 %v1585_v45  ;;  %846 = vmatprep.subr.bf16.mxu1 %v1618_v56 }
  0xcc   : > { %804 = vmatpush1.bf16.msra.mxu0 %v1589_v48  ;;  %847 = vmatpush1.bf16.msra.mxu1 %v1620_v58 }
  0xcd   : > { %805 = vmatprep.subr.bf16.mxu0 %v1591_v49  ;;  %848 = vmatprep.subr.bf16.mxu1 %v1621_v59 }
  0xd0   : > { %806 = vmatpush1.bf16.msra.mxu0 %v1595_v52  ;;  %849 = vmatpush1.bf16.msra.mxu1 %v1623_v61 }
  0xd1   : > { %807 = vmatprep.subr.bf16.mxu0 %v1597_v53  ;;  %850 = vmatprep.subr.bf16.mxu1 %v1624_v63 }
  0xd4   : > { %808 = vmatpush1.bf16.msra.mxu0 %v1601_v55  ;;  %851 = vmatpush1.bf16.msra.mxu1 %v1626_v2 }
  0xd5   : > { %809 = vmatprep.subr.bf16.mxu0 %v1603_v57  ;;  %852 = vmatprep.subr.bf16.mxu1 %v1627_v4 }
  0xd8   : > { %810 = vmatpush1.bf16.msra.mxu0 %v1607_v60  ;;  %853 = vmatpush1.bf16.msra.mxu1 %v1629_v6 }
  0xd9   : > { %1103 = vmatprep.subr.bf16.mxu0 %v1632_v62 }
  0xdb   : > { %812 = vmatmul.mubr.bf16.vlgmr.msra.gmra.mrb[0].mxu0 %v1609_v0  ;;  %855 = vmatmul.mubr.bf16.vlgmr.msra.gmra.mrb[0].mxu1 %v1609_v0 }
  0xdc   : > { %1104 = vmatpush1.bf16.msra.mxu0 %v1630_v1 }
  0xdd   : > { %1105 = vmatprep.subr.bf16.mxu0 %v1635_v3 }
  0xe0   : > { %1106 = vmatpush1.bf16.msra.mxu0 %v1633_v5 }
  0xe1   : > { %1107 = vmatprep.subr.bf16.mxu0 %v1638_v7 }
  0xe4   : > { %1108 = vmatpush1.bf16.msra.mxu0 %v1636_v8 }
  0xe5   : > { %1109 = vmatprep.subr.bf16.mxu0 %v1641_v9 }
  0xe8   : > { %1110 = vmatpush1.bf16.msra.mxu0 %v1639_v10  ;;  %v439_v10 = vsub.s32 2, %v2265_v36 }
  0xe9   : > { %1111 = vmatprep.subr.bf16.mxu0 %v1644_v11  ;;  %v443_v11 = vsub.s32 3, %v2265_v36 }
  0xec   : > { %1112 = vmatpush1.bf16.msra.mxu0 %v1642_v12  ;;  %v440_v12 = vrot.slane %v427_v38, %v439_v10 }
  0xed   : > { %1113 = vmatprep.subr.bf16.mxu0 %v1647_v13 }
  0xf0   : > { %1114 = vmatpush1.bf16.msra.mxu0 %v1645_v14  ;;  %v444_v14 = vrot.slane %v427_v38, %v443_v11 }
  0xf1   : > { %1115 = vmatprep.subr.bf16.mxu0 %v1650_v15 }
  0xf4   : > { %1116 = vmatpush1.bf16.msra.mxu0 %v1648_v16 }
  0xf5   : > { %1117 = vmatprep.subr.bf16.mxu0 %v1653_v17 }
  0xf8   : > { %1118 = vmatpush1.bf16.msra.mxu0 %v1651_v18 }
  0xf9   : > { %1119 = vmatprep.subr.bf16.mxu0 %v1656_v19 }
  0xfc   : > { %1120 = vmatpush1.bf16.msra.mxu0 %v1654_v20 }
  0xfd   : > { %1121 = vmatprep.subr.bf16.mxu0 %v1659_v21 }
 0x100   : > { %1122 = vmatpush1.bf16.msra.mxu0 %v1657_v22 }
 0x101   : > { %1123 = vmatprep.subr.bf16.mxu0 %v1662_v23 }
 0x104   : > { %1124 = vmatpush1.bf16.msra.mxu0 %v1660_v24 }
 0x105   : > { %1125 = vmatprep.subr.bf16.mxu0 %v1665_v26 }
 0x108   : > { %1126 = vmatpush1.bf16.msra.mxu0 %v1663_v25 }
 0x109   : > { %1127 = vmatprep.subr.bf16.mxu0 %v1668_v27 }
 0x10c   : > { %1128 = vmatpush1.bf16.msra.mxu0 %v1666_v28 }
 0x10d   : > { %1129 = vmatprep.subr.bf16.mxu0 %v1671_v29 }
 0x110   : > { %1130 = vmatpush1.bf16.msra.mxu0 %v1669_v30 }
 0x111   : > { %1131 = vmatprep.subr.bf16.mxu0 %v1674_v31 }
 0x114   : > { %1132 = vmatpush1.bf16.msra.mxu0 %v1672_v32 }
 0x115   : > { %1133 = vmatprep.subr.bf16.mxu0 %v1677_v33 }
 0x118   : > { %1134 = vmatpush1.bf16.msra.mxu0 %v1675_v34 }
 0x1ae   : > { %v813_v42 = vpop.f32.mrb[0].mxu0  ;;  %v856_v62 = vpop.f32.mrb[0].mxu1 }
 0x1af   : > { %v814_v43 = vadd.f32 %v813_v42, %v432_v40  ;;  %v815_v44 = vpop.f32.mrb[1].mxu0  ;;  %v858_v1 = vpop.f32.mrb[1].mxu1  ;;  %v857_v20 = vadd.f32 %v856_v62, %v440_v12 }
 0x1b0   : > { %v816_v45 = vadd.f32 %v815_v44, %v436_v41  ;;  %v817_v46 = vpop.f32.mrb[2].mxu0  ;;  %v860_v4 = vpop.f32.mrb[2].mxu1  ;;  %v859_v23 = vadd.f32 %v858_v1, %v444_v14  ;;  %v907_v44 = vld [vmem:[#allocation2] sm:$0xff] }
 0x1b1   : > { %v865_v47 = vmul.f32 %v814_v43, %v814_v43  ;;  %v818_v48 = vadd.f32 %v817_v46, %v432_v40  ;;  %v819_v49 = vpop.f32.mrb[3].mxu0  ;;  %v862_v7 = vpop.f32.mrb[3].mxu1  ;;  %v861_v31 = vadd.f32 %v860_v4, %v440_v12  ;;  %v908_v46 = vld [vmem:[#allocation2 + $0x8] sm:$0xff] }
 0x1b2   : > { %v866_v50 = vmul.f32 %v816_v45, %v816_v45  ;;  %v820_v51 = vadd.f32 %v819_v49, %v436_v41  ;;  %v863_v34 = vadd.f32 %v862_v7, %v444_v14  ;;  %v909_v49 = vld [vmem:[#allocation2 + $0x10] sm:$0xff] }
 0x1b3   : > { %v869_v52 = vmul.f32 %v865_v47, %v814_v43  ;;  %v867_v53 = vmul.f32 %v818_v48, %v818_v48 }
 0x1b4   : > { %v870_v54 = vmul.f32 %v866_v50, %v816_v45  ;;  %v868_v55 = vmul.f32 %v820_v51, %v820_v51 }
 0x1b5   : > { %v873_v56 = vmul.f32 0.044715, %v869_v52  ;;  %v871_v57 = vmul.f32 %v867_v53, %v818_v48 }
 0x1b6   : > { %v874_v58 = vmul.f32 0.044715, %v870_v54  ;;  %v872_v59 = vmul.f32 %v868_v55, %v820_v51 }
 0x1b7   : > { %v877_v60 = vadd.f32 %v873_v56, %v814_v43  ;;  %v875_v61 = vmul.f32 0.044715, %v871_v57  ;;  %v1162_v56 = vld [vmem:[%s2329_s4] sm:$0x3] (!%p1431_p1) }
 0x1b8   : > { %v878_v63 = vadd.f32 %v874_v58, %v816_v45  ;;  %v876_v0 = vmul.f32 0.044715, %v872_v59  ;;  %v1167_v58 = vrot.slane (!%p1431_p1), %v1162_v56, %v431_v37  ;;  %v1171_v59 = vrot.slane (!%p1431_p1), %v1162_v56, %v435_v39 }
 0x1b9   : > { %v881_v2 = vmul.f32 0.7978846, %v877_v60  ;;  %v879_v3 = vadd.f32 %v875_v61, %v818_v48 }
 0x1ba   : > { %v882_v5 = vmul.f32 0.7978846, %v878_v63  ;;  %v880_v6 = vadd.f32 %v876_v0, %v820_v51 }
 0x1bb   : > { %1678 = vtanh.f32 %v881_v2  ;;  %v883_v8 = vmul.f32 0.7978846, %v879_v3 }
 0x1bc   : > { %1680 = vtanh.f32 %v882_v5  ;;  %v884_v9 = vmul.f32 0.7978846, %v880_v6 }
 0x1bd   : > { %1682 = vtanh.f32 %v883_v8 }
 0x1be   : > { %1684 = vtanh.f32 %v884_v9 }
 0x1c5   : > { %v1679_v13 = vpop.eup %1678 }
 0x1c6   : > { %v1681_v15 = vpop.eup %1680  ;;  %v889_v16 = vadd.f32 1.0, %v1679_v13 }
 0x1c7   : > { %v1683_v17 = vpop.eup %1682  ;;  %v890_v18 = vadd.f32 1.0, %v1681_v15 }
 0x1c8   : > { %v1685_v19 = vpop.eup %1684  ;;  %v893_v21 = vmul.f32 0.5, %v889_v16  ;;  %v891_v22 = vadd.f32 1.0, %v1683_v17 }
 0x1c9   : > { %v894_v24 = vmul.f32 0.5, %v890_v18  ;;  %v892_v25 = vadd.f32 1.0, %v1685_v19 }
 0x1ca   : > { %v897_v26 = vmul.f32 %v893_v21, %v814_v43  ;;  %v895_v27 = vmul.f32 0.5, %v891_v22 }
 0x1cb   : > { %v898_v28 = vmul.f32 %v894_v24, %v816_v45  ;;  %v896_v29 = vmul.f32 0.5, %v892_v25  ;;  %v910_v45 = vld [vmem:[#allocation2 + $0x18] sm:$0xff] }
 0x1cc   : > { %v901_v30 = vmul.f32 %v897_v26, %v857_v20  ;;  %v899_v32 = vmul.f32 %v895_v27, %v818_v48 }
 0x1cd   : > { %v902_v33 = vmul.f32 %v898_v28, %v859_v23  ;;  %v900_v35 = vmul.f32 %v896_v29, %v820_v51 }
 0x1ce   : > { %v903_v38 = vmul.f32 %v899_v32, %v861_v31 }
 0x1cf   : > { %v904_v40 = vmul.f32 %v900_v35, %v863_v34 }
 0x1d0   : > { %v905_v41 = vpack.c.bf16 %v903_v38, %v901_v30 }
 0x1d1   : > { %v906_v42 = vpack.c.bf16 %v904_v40, %v902_v33 }
 0x1d3   : > { %1135 = vmatprep.mubr.bf16.mxu0 %v906_v42 }
 0x1d4   : > { %1136 = vmatmul.mubr.bf16.vlgmr.msra.gmra.mrb[4].mxu0 %v905_v41 }
 0x2a7   : > { %v1137_v47 = vpop.f32.mrb[4].mxu0  ;;  %1157 = sbr.rel (%p1431_p1) target bundleno = 696 (0x2b8), region = 64 }
 0x2a8   : > { %v1146_v43 = vadd.f32 %v1137_v47, %v907_v44  ;;  %v1139_v50 = vpop.f32.mrb[5].mxu0 }
 0x2a9   : > { %v1147_v52 = vadd.f32 %v1139_v50, %v908_v46  ;;  %v1141_v53 = vpop.f32.mrb[6].mxu0 }
 0x2aa   : > { %1150 = vst [vmem:[#allocation2] sm:$0xff] %v1146_v43  ;;  %v1148_v48 = vadd.f32 %v1141_v53, %v909_v49  ;;  %v1143_v54 = vpop.f32.mrb[7].mxu0 }
 0x2ab   : > { %1151 = vst [vmem:[#allocation2 + $0x8] sm:$0xff] %v1147_v52  ;;  %v1149_v51 = vadd.f32 %v1143_v54, %v910_v45 }
 0x2ac   : > { %1152 = vst [vmem:[#allocation2 + $0x10] sm:$0xff] %v1148_v48 }
 0x2ad   : > { %1153 = vst [vmem:[#allocation2 + $0x18] sm:$0xff] %v1149_v51 }
 0x2b1   : > { %v1158_v55 = vld [vmem:[#allocation2] sm:$0xff] }
 0x2b2   : > { %v1159_v57 = vld [vmem:[#allocation2 + $0x8] sm:$0xff]  ;;  %v1174_v62 = vadd.f32 %v1167_v58, %v1158_v55 }
 0x2b3   : > { %v1160_v60 = vld [vmem:[#allocation2 + $0x10] sm:$0xff]  ;;  %v1175_v63 = vadd.f32 %v1171_v59, %v1159_v57 }
 0x2b4   : > { %v1161_v61 = vld [vmem:[#allocation2 + $0x18] sm:$0xff]  ;;  %v1176_v0 = vadd.f32 %v1167_v58, %v1160_v60  ;;  %1178 = vst [vmem:[#allocation11] sm:$0xff] %v1174_v62 }
 0x2b5   : > { %v1177_v1 = vadd.f32 %v1171_v59, %v1161_v61  ;;  %1179 = vst [vmem:[#allocation11 + $0x8] sm:$0xff] %v1175_v63 }
 0x2b6   : > { %1180 = vst [vmem:[#allocation11 + $0x10] sm:$0xff] %v1176_v0 }
 0x2b7   : > { %1181 = vst [vmem:[#allocation11 + $0x18] sm:$0xff] %v1177_v1 }
 0x2b8 PF: > { %p1471_p4 = scmp.eq.s32.totalorder %s2028_s17, 1  ;;  %s1904_s21 = smov [#allocation11]  }
 0x2b9   : > { %s1192_s8 = sshll.u32 %s1904_s21, 4  ;;  %s1193_s8 = int_to_ptr.vmem [resolvable:$true] %s1192_s8 }
 0x2ba   : > { %s1804_s14 = scalar_lea.vmem %s1193_s8, 512  ;;  %p1811_p7 = scmp.lt.s32.totalorder %s1193_s8, %s1193_s8 }
 0x2bb   : > { %p1805_p6 = scmp.ne.s32.totalorder %s1193_s8, %s1804_s14  ;;  %p1812_p9 = scmp.lt.s32.totalorder %s1804_s14, %s1804_s14 }
 0x2bd   : > { %p1806_p13 = pnand %p1805_p6, %p1471_p4  ;;  %p1813_p12 = por %p1812_p9, %p1811_p7 }
 0x2bf   : > { %p1807_p3 = pneg %p1806_p13 }
 0x2c1   : > { %p1814_p10 = pnand %p1813_p12, %p1807_p3 }
 0x2c3   : > { %1817 = shalt.err (!%p1814_p10)
}
 0x2c4   : > { %s1818_s11 = scalar_lea.hbm %s2330_s5, 512 }
 0x2c5   : > { %p1819_p8 = scmp.ne.s32.totalorder %s2330_s5, %s1818_s11  ;;  %p1824_p0 = scmp.lt.u32.totalorder %s1818_s11, %s2330_s5 }
 0x2c7   : > { %p1820_p11 = pnand %p1819_p8, %p1471_p4 }
 0x2c9   : > { %p1821_p5 = pneg %p1820_p11 }
 0x2cb   : > { %p1826_p2 = pnand %p1824_p0, %p1821_p5 }
 0x2cd   : > { %1829 = shalt.err (!%p1826_p2)
}
 0x2ce   : > { %s1905_s15 = smov 256   ;;  %s1906_s30 = smov 16  }
 0x2cf   : > { %1451 = dma.vmem_to_hbm [thread:$0]  (%p1471_p4), %s1193_s8, 512, %s2330_s5, [#allocation5], %s1905_s15, %s1905_s15, %s1906_s30  }
 0x2d0   : > { %1867 = dma.done.wait (%p1471_p4), [#allocation5], 512  }
 0x2d1   : > { %1869 = vsyncadd (%p1471_p4), [#allocation5], 4294966784 }
 0x2d2 PF: > { %s23_s23 = sadd.s32 1, %s1892_s23   ;;  %s2354_s26 = sld [smem:[#allocation17_spill]] }
 0x2d3   : > { %p20_p1 = scmp.ge.s32.totalorder %s23_s23, 4   ;;  %s2355_s24 = sld [smem:[#allocation16_spill]] }
 0x2d4   : > { %s2356_s18 = smov %s1876_s19  ;;  %s2357_s19 = smov %s1880_s20 }
 0x2d5   : > { %s2359_s21 = smov %s1888_s22  ;;  %22 = sbr.rel (!%p20_p1) target bundleno = 10 (0xa), region = 116 }
 0x2d8   : > { %s2358_s20 = smov %s2354_s26 }
 0x2d9   : > { %s2360_s22 = smov %s2355_s24 }
 0x2dc   :  { %1208 = vsyncpa [#allocation4], 1 }
 0x2dd   :  { %1210 = vsyncpa [#allocation4 + $0x1], 1 }
 0x2de   :  { %1211 = vsyncpa [#allocation7], 1 }
 0x2df   :  { %1213 = vsyncpa [#allocation7 + $0x1], 1 }
 0x2e0   :  { %1214 = vsyncpa [#allocation10], 1 }
 0x2e1   :  { %1216 = vsyncpa [#allocation10 + $0x1], 1 }
 0x2e2   :  { %1217 = vsyncpa [#allocation5], 1 }
 0x2e3   :  { %1219 = vsyncpa [#allocation5 + $0x1], 1 }

</bundles_post_ra>
